<compile_context>
chip_gen: v7x
topology: tpu7x:2x2x1
jax: 0.10.0
libtpu: 0.0.40
codegen_flags: <defaults>
</compile_context>

<pallas_src>
import functools

import jax
import jax.numpy as jnp
from jax import lax
from jax.experimental import pallas as pl
from jax.experimental.pallas import tpu as pltpu

LANE = 128     # lane width: embedding dim and class dim are padded up to this
SUBLANE = 8    # row padding so the output store is sublane-dense


# ----------------------------- Pallas kernel -------------------------------

def proto_net_kernel(x_ref, w_ref, b_ref, onehot_ref, o_ref):
    """Fused: ReLU(x@W+b) for all rows, prototype means, -cdist (MXU form)."""
    # Backbone: one MXU matmul over the combined support+query rows
    # (bf16 operands, f32 accumulation), f32 bias + ReLU epilogue.
    z = jnp.dot(x_ref[...], w_ref[...], preferred_element_type=jnp.float32)
    z = jnp.maximum(z + b_ref[...], 0.0)                      # [mp, dp] f32

    # Prototypes: (count-scaled one-hot, zero on query/pad rows)^T @ z.
    # The one-hot already carries 1/|class| per column, so this IS the mean.
    protos = lax.dot_general(
        onehot_ref[...], z,
        dimension_numbers=(((0,), (0,)), ((), ())),
        preferred_element_type=jnp.float32)                   # [nwp, dp]

    # Euclidean distance in MXU form: d2 = |z|^2 + |p|^2 - 2 z.p^T (all f32).
    cross = lax.dot_general(
        z, protos,
        dimension_numbers=(((1,), (1,)), ((), ())),
        preferred_element_type=jnp.float32)                   # [mp, nwp]
    z_sq = jnp.sum(z * z, axis=-1, keepdims=True)             # [mp, 1]
    # Row-vector |p|^2 via a ones-matmul (stays on the MXU, no sublane->lane
    # transpose of a [nwp, 1] reduction result).
    ones_row = jnp.ones((1, protos.shape[1]), jnp.float32)
    p_sq = lax.dot_general(
        ones_row, protos * protos,
        dimension_numbers=(((1,), (1,)), ((), ())),
        preferred_element_type=jnp.float32)                   # [1, nwp]

    d2 = jnp.maximum(z_sq + p_sq - 2.0 * cross, 0.0)          # clamp rounding
    o_ref[...] = -jnp.sqrt(d2)


# ----------------------------- wrappers -------------------------------------

def _round_up(x, m):
    return ((x + m - 1) // m) * m


def prepare_proto_net_params(w, b):
    """Pad/cast the static Linear(F, D) parameters ONCE (not per call)."""
    f, d = w.shape
    dp = _round_up(max(d, LANE), LANE)
    w_pad = jnp.zeros((f, dp), jnp.bfloat16).at[:, :d].set(
        jnp.asarray(w).astype(jnp.bfloat16))
    b_pad = jnp.zeros((1, dp), jnp.float32).at[:, :d].set(
        jnp.asarray(b, jnp.float32).reshape(1, d))
    return w_pad, b_pad


@functools.partial(jax.jit, static_argnames=("n_way",))
def prototypical_network_forward(support_images, support_labels, query_images,
                                 w_pad, b_pad, n_way):
    """Forward pass of PrototypicalNetworkModel with a Linear+ReLU backbone.

    support_images: [Ns, C, H, W], support_labels: [Ns] int in [0, n_way),
    query_images: [Nq, C, H, W], w_pad/b_pad from prepare_proto_net_params.
    Returns scores: [Nq, n_way] = -cdist(z_query, z_proto).
    """
    ns = support_images.shape[0]
    nq = query_images.shape[0]
    f = 1
    for s in support_images.shape[1:]:
        f *= int(s)
    dp = w_pad.shape[1]
    nwp = _round_up(max(n_way, LANE), LANE)   # lane-dense class dim
    m = ns + nq
    mp = _round_up(m, SUBLANE)                # sublane-dense row count

    # Flatten NCHW row-major (== torch.flatten) and fuse support+query into
    # one LHS so the backbone is a single MXU pass.
    xs = support_images.reshape(ns, f)
    xq = query_images.reshape(nq, f)
    x = jnp.concatenate([xs, xq], axis=0).astype(jnp.bfloat16)
    if mp != m:
        x = jnp.pad(x, ((0, mp - m), (0, 0)))

    # Count-scaled one-hot over the padded row axis: column c holds 1/|class c|
    # on support members of class c, zero on query / padding rows, so the
    # prototype matmul directly yields per-class means.
    # TODO(synk): assumes labels take values 0..n_way-1 (standard few-shot
    # episode); torch.unique's handling of arbitrary/missing label values is
    # not replicated (a missing class yields a zero prototype here instead of
    # being dropped).
    class_ids = jnp.arange(n_way, dtype=support_labels.dtype)
    onehot = (support_labels[:, None] == class_ids[None, :]).astype(jnp.float32)
    counts = jnp.maximum(jnp.sum(onehot, axis=0, keepdims=True), 1.0)  # NaN guard
    onehot_scaled = onehot / counts
    onehot_pad = jnp.zeros((mp, nwp), jnp.float32).at[:ns, :n_way].set(
        onehot_scaled)

    scores_pad = pl.pallas_call(
        proto_net_kernel,
        out_shape=jax.ShapeDtypeStruct((mp, nwp), jnp.float32),
        grid=(1,),
        in_specs=[
            pl.BlockSpec((mp, f), lambda i: (0, 0)),
            pl.BlockSpec((f, dp), lambda i: (0, 0)),
            pl.BlockSpec((1, dp), lambda i: (0, 0)),
            pl.BlockSpec((mp, nwp), lambda i: (0, 0)),
        ],
        out_specs=pl.BlockSpec((mp, nwp), lambda i: (0, 0)),
        compiler_params=pltpu.CompilerParams(
            dimension_semantics=("arbitrary",)),
    )(x, w_pad, b_pad, onehot_pad)

    # Query rows / real classes only.
    return scores_pad[ns:ns + nq, :n_way]


# ----------------------------- main ------------------------------------------

if __name__ == "__main__":
    key = jax.random.PRNGKey(0)
    k_w, k_b, k_s, k_q = jax.random.split(key, 4)

    # 5-way, 2-shot episode with 6 query images; NCHW 4x16x16 inputs.
    n_way, n_shot, n_query = 5, 2, 6
    C, H, W = 4, 16, 16
    F, D = C * H * W, 32

    support_images = jax.random.normal(k_s, (n_way * n_shot, C, H, W), jnp.float32)
    query_images = jax.random.normal(k_q, (n_query, C, H, W), jnp.float32)
    support_labels = jnp.array([0, 0, 1, 1, 2, 2, 3, 3, 4, 4], dtype=jnp.int32)

    # Deterministic Linear(F -> D) backbone parameters.
    w = jax.random.normal(k_w, (F, D), jnp.float32) * 0.02
    b = jax.random.normal(k_b, (D,), jnp.float32) * 0.01

    # Static parameters padded/cast once, outside the jitted forward.
    w_pad, b_pad = prepare_proto_net_params(w, b)

    scores = prototypical_network_forward(
        support_images, support_labels, query_images, w_pad, b_pad, n_way)
    scores = jax.block_until_ready(scores)
    assert scores.shape == (n_query, n_way)

    # Pure-JAX f32 reference.
    xs_ref = support_images.reshape(n_way * n_shot, F)
    xq_ref = query_images.reshape(n_query, F)
    zs_ref = jnp.maximum(xs_ref @ w + b, 0.0)
    zq_ref = jnp.maximum(xq_ref @ w + b, 0.0)
    protos_ref = jnp.stack(
        [zs_ref[support_labels == c].mean(0) for c in range(n_way)])
    dists_ref = jnp.sqrt(
        jnp.sum((zq_ref[:, None, :] - protos_ref[None, :, :]) ** 2, axis=-1))
    ref = -dists_ref

    tol = 5e-2  # bf16 MXU inputs (f32 accumulation + f32 distance math)
    assert jnp.allclose(scores, ref, atol=tol, rtol=tol), (scores, ref)

    print("KERNEL_OK")
</pallas_src>

<mosaic_0001>
module attributes {stable_mosaic.version = 11 : i64} {
  func.func @proto_net_kernel(%arg0: i32, %arg1: memref<16x1024xbf16, #tpu.memory_space<vmem>>, %arg2: memref<1024x128xbf16, #tpu.memory_space<vmem>>, %arg3: memref<1x128xf32, #tpu.memory_space<vmem>>, %arg4: memref<16x128xf32, #tpu.memory_space<vmem>>, %arg5: memref<16x128xf32, #tpu.memory_space<vmem>>) attributes {dimension_semantics = [#tpu.dimension_semantics<arbitrary>], iteration_bounds = array<i64: 1>, scalar_prefetch = 0 : i64, scratch_operands = 0 : i64, tpu.core_type = #tpu.core_type<tc>, window_params = [{pipeline_mode = #tpu.pipeline_mode<synchronous>, transform_indices = @transform_0, window_bounds = array<i64: 16, 1024>}, {pipeline_mode = #tpu.pipeline_mode<synchronous>, transform_indices = @transform_1, window_bounds = array<i64: 1024, 128>}, {pipeline_mode = #tpu.pipeline_mode<synchronous>, transform_indices = @transform_2, window_bounds = array<i64: 1, 128>}, {pipeline_mode = #tpu.pipeline_mode<synchronous>, transform_indices = @transform_3, window_bounds = array<i64: 16, 128>}, {pipeline_mode = #tpu.pipeline_mode<synchronous>, transform_indices = @transform_4, window_bounds = array<i64: 16, 128>}]} {
    %c0 = arith.constant 0 : index
    %c0_0 = arith.constant 0 : index
    %0 = vector.load %arg1[%c0, %c0_0] : memref<16x1024xbf16, #tpu.memory_space<vmem>>, vector<16x1024xbf16>
    %c0_1 = arith.constant 0 : index
    %c0_2 = arith.constant 0 : index
    %1 = vector.load %arg2[%c0_1, %c0_2] : memref<1024x128xbf16, #tpu.memory_space<vmem>>, vector<1024x128xbf16>
    %cst = arith.constant dense<0.000000e+00> : vector<16x128xf32>
    %2 = tpu.matmul %0, %1, %cst {dimension_numbers = #tpu.dot_dimension_numbers<[1], [0], [0], [1], [0, 0, 1, 1], [], []>} : vector<16x1024xbf16>, vector<1024x128xbf16>, vector<16x128xf32> -> vector<16x128xf32>
    %c0_3 = arith.constant 0 : index
    %c0_4 = arith.constant 0 : index
    %3 = vector.load %arg3[%c0_3, %c0_4] : memref<1x128xf32, #tpu.memory_space<vmem>>, vector<1x128xf32>
    %4 = vector.broadcast %3 : vector<1x128xf32> to vector<16x128xf32>
    %5 = arith.addf %2, %4 : vector<16x128xf32>
    %cst_5 = arith.constant 0.000000e+00 : f32
    %6 = vector.broadcast %cst_5 : f32 to vector<16x128xf32>
    %7 = arith.maximumf %5, %6 : vector<16x128xf32>
    %c0_6 = arith.constant 0 : index
    %c0_7 = arith.constant 0 : index
    %8 = vector.load %arg4[%c0_6, %c0_7] : memref<16x128xf32, #tpu.memory_space<vmem>>, vector<16x128xf32>
    %cst_8 = arith.constant dense<0.000000e+00> : vector<128x128xf32>
    %9 = tpu.matmul %8, %7, %cst_8 {dimension_numbers = #tpu.dot_dimension_numbers<[0], [0], [1], [1], [0, 1, 1, 1], [], []>} : vector<16x128xf32>, vector<16x128xf32>, vector<128x128xf32> -> vector<128x128xf32>
    %cst_9 = arith.constant dense<0.000000e+00> : vector<16x128xf32>
    %10 = tpu.matmul %7, %9, %cst_9 {dimension_numbers = #tpu.dot_dimension_numbers<[1], [1], [0], [0], [0, 0, 1, 0], [], []>} : vector<16x128xf32>, vector<128x128xf32>, vector<16x128xf32> -> vector<16x128xf32>
    %11 = arith.mulf %7, %7 : vector<16x128xf32>
    %cst_10 = arith.constant dense<0.000000e+00> : vector<16xf32>
    %12 = vector.multi_reduction <add>, %11, %cst_10 [1] : vector<16x128xf32> to vector<16xf32>
    %13 = vector.shape_cast %12 : vector<16xf32> to vector<16x1xf32>
    %cst_11 = arith.constant 1.000000e+00 : f32
    %14 = vector.broadcast %cst_11 : f32 to vector<1x128xf32>
    %15 = arith.mulf %9, %9 : vector<128x128xf32>
    %cst_12 = arith.constant dense<0.000000e+00> : vector<1x128xf32>
    %16 = tpu.matmul %14, %15, %cst_12 {dimension_numbers = #tpu.dot_dimension_numbers<[1], [1], [0], [0], [0, 0, 1, 0], [], []>} : vector<1x128xf32>, vector<128x128xf32>, vector<1x128xf32> -> vector<1x128xf32>
    %17 = vector.broadcast %13 : vector<16x1xf32> to vector<16x128xf32>
    %18 = vector.broadcast %16 : vector<1x128xf32> to vector<16x128xf32>
    %19 = arith.addf %17, %18 : vector<16x128xf32>
    %cst_13 = arith.constant 2.000000e+00 : f32
    %20 = vector.broadcast %cst_13 : f32 to vector<16x128xf32>
    %21 = arith.mulf %20, %10 : vector<16x128xf32>
    %22 = arith.subf %19, %21 : vector<16x128xf32>
    %cst_14 = arith.constant 0.000000e+00 : f32
    %23 = vector.broadcast %cst_14 : f32 to vector<16x128xf32>
    %24 = arith.maximumf %22, %23 : vector<16x128xf32>
    %25 = math.sqrt %24 : vector<16x128xf32>
    %cst_15 = arith.constant 0.000000e+00 : f32
    %26 = vector.broadcast %cst_15 : f32 to vector<16x128xf32>
    %27 = arith.subf %26, %25 : vector<16x128xf32>
    %c0_16 = arith.constant 0 : index
    %c0_17 = arith.constant 0 : index
    %28 = vector.load %arg5[%c0_16, %c0_17] : memref<16x128xf32, #tpu.memory_space<vmem>>, vector<16x128xf32>
    tpu.vector_store %arg5[%c0_16, %c0_17], %27 {strides = array<i32>} : memref<16x128xf32, #tpu.memory_space<vmem>>, vector<16x128xf32>,
    return
  }
  func.func @transform_0(%arg0: i32) -> (i32, i32) {
    %c0_i32 = arith.constant 0 : i32
    %c0_i32_0 = arith.constant 0 : i32
    %c0_i32_1 = arith.constant 0 : i32
    return %c0_i32, %c0_i32_0 : i32, i32
  }
  func.func @transform_1(%arg0: i32) -> (i32, i32) {
    %c0_i32 = arith.constant 0 : i32
    %c0_i32_0 = arith.constant 0 : i32
    %c0_i32_1 = arith.constant 0 : i32
    return %c0_i32, %c0_i32_0 : i32, i32
  }
  func.func @transform_2(%arg0: i32) -> (i32, i32) {
    %c0_i32 = arith.constant 0 : i32
    %c0_i32_0 = arith.constant 0 : i32
    %c0_i32_1 = arith.constant 0 : i32
    return %c0_i32, %c0_i32_0 : i32, i32
  }
  func.func @transform_3(%arg0: i32) -> (i32, i32) {
    %c0_i32 = arith.constant 0 : i32
    %c0_i32_0 = arith.constant 0 : i32
    %c0_i32_1 = arith.constant 0 : i32
    return %c0_i32, %c0_i32_0 : i32, i32
  }
  func.func @transform_4(%arg0: i32) -> (i32, i32) {
    %c0_i32 = arith.constant 0 : i32
    %c0_i32_0 = arith.constant 0 : i32
    %c0_i32_1 = arith.constant 0 : i32
    return %c0_i32, %c0_i32_0 : i32, i32
  }
}

</mosaic_0001>

<bundles_post_ra>
// kernel: prototypical_network_forward.1
= control target key start
LH: loop header
LB: loop body
LE: loop exit
PB: predicated region body
PF: predicated region fallthrough
CT: control target
= control target key end

     0   :  { %vm785_vm0 = vcmask 130048   ;;  %vm1641_vm1 = vmmov 0   ;;  %s1930_s1 = inlined_call_operand.vmem [shape: bf16[1024,128], index: 1, kind: input, shape index: {}]   ;;  %s1931_s0 = inlined_call_operand.vmem [shape: bf16[16,1024], index: 0, kind: input, shape index: {}]   ;;  %s1932_s3 = inlined_call_operand.vmem [shape: f32[16,128], index: 3, kind: input, shape index: {}]   ;;  %s1933_s2 = inlined_call_operand.vmem [shape: f32[1,128], index: 2, kind: input, shape index: {}]   ;;  %s1934_s4 = inlined_call_operand.vmem [shape: f32[16,128], index: 4, kind: output, shape index: {}]  }
   0x1   :  { %v1572_v0 = vld [vmem:[%s1930_s1 + $0x40] sm:$0xff]   ;;  %v1576_v4 = vld [vmem:[%s1930_s1 + $0x48] sm:$0xff]   ;;  %v1580_v8 = vld [vmem:[%s1930_s1 + $0x50] sm:$0xff]  }
   0x2   :  { %v1573_v1 = vld [vmem:[%s1930_s1 + $0xc0] sm:$0xff]   ;;  %1269 = vmatprep.subr.bf16.mxu0 %v1572_v0  ;;  %v1577_v5 = vld [vmem:[%s1930_s1 + $0xc8] sm:$0xff]   ;;  %v1581_v9 = vld [vmem:[%s1930_s1 + $0xd0] sm:$0xff]  }
   0x3   :  { %v1574_v2 = vld [vmem:[%s1930_s1] sm:$0xff]   ;;  %1291 = vmatprep.subr.bf16.mxu1 %v1573_v1  ;;  %v1578_v6 = vld [vmem:[%s1930_s1 + $0x8] sm:$0xff]   ;;  %v1582_v10 = vld [vmem:[%s1930_s1 + $0x10] sm:$0xff]  }
   0x4   :  { %v1575_v3 = vld [vmem:[%s1930_s1 + $0x80] sm:$0xff]   ;;  %1270 = vmatpush3.bf16.msra.mxu0 %v1574_v2  ;;  %v1579_v7 = vld [vmem:[%s1930_s1 + $0x88] sm:$0xff]   ;;  %v1583_v11 = vld [vmem:[%s1930_s1 + $0x90] sm:$0xff]  }
   0x5   :  { %1292 = vmatpush3.bf16.msra.mxu1 %v1575_v3  ;;  %1271 = vmatprep.subr.bf16.mxu0 %v1576_v4  ;;  %v1584_v12 = vld [vmem:[%s1930_s1 + $0x58] sm:$0xff]   ;;  %v1588_v16 = vld [vmem:[%s1930_s1 + $0x60] sm:$0xff]   ;;  %v1592_v20 = vld [vmem:[%s1930_s1 + $0x68] sm:$0xff]  }
   0x6   :  { %1293 = vmatprep.subr.bf16.mxu1 %v1577_v5  ;;  %v1585_v13 = vld [vmem:[%s1930_s1 + $0xd8] sm:$0xff]   ;;  %v1589_v17 = vld [vmem:[%s1930_s1 + $0xe0] sm:$0xff]   ;;  %v1593_v21 = vld [vmem:[%s1930_s1 + $0xe8] sm:$0xff]  }
   0x7   :  { %v1586_v14 = vld [vmem:[%s1930_s1 + $0x18] sm:$0xff]   ;;  %v1590_v18 = vld [vmem:[%s1930_s1 + $0x20] sm:$0xff]   ;;  %v1594_v22 = vld [vmem:[%s1930_s1 + $0x28] sm:$0xff]  }
   0x8   :  { %1272 = vmatpush3.bf16.msra.mxu0 %v1578_v6  ;;  %v1587_v15 = vld [vmem:[%s1930_s1 + $0x98] sm:$0xff]   ;;  %v1591_v19 = vld [vmem:[%s1930_s1 + $0xa0] sm:$0xff]   ;;  %v1595_v23 = vld [vmem:[%s1930_s1 + $0xa8] sm:$0xff]  }
   0x9   :  { %1294 = vmatpush3.bf16.msra.mxu1 %v1579_v7  ;;  %1273 = vmatprep.subr.bf16.mxu0 %v1580_v8  ;;  %v1596_v24 = vld [vmem:[%s1930_s1 + $0x70] sm:$0xff]   ;;  %v1600_v28 = vld [vmem:[%s1930_s1 + $0x78] sm:$0xff]   ;;  %v18_v32 = vld [vmem:[%s1931_s0] sm:$0xff] }
   0xa   :  { %1295 = vmatprep.subr.bf16.mxu1 %v1581_v9  ;;  %v1597_v25 = vld [vmem:[%s1930_s1 + $0xf0] sm:$0xff]   ;;  %v1601_v29 = vld [vmem:[%s1930_s1 + $0xf8] sm:$0xff]   ;;  %v22_v33 = vld [vmem:[%s1931_s0 + $0x20] sm:$0xff] }
   0xb   :  { %v1598_v26 = vld [vmem:[%s1930_s1 + $0x30] sm:$0xff]   ;;  %v1602_v30 = vld [vmem:[%s1930_s1 + $0x38] sm:$0xff]   ;;  %v19_v34 = vld [vmem:[%s1931_s0 + $0x8] sm:$0xff]  ;;  %v1181_v35 = vcombine.low %v18_v32, %v22_v33  ;;  %v1182_v36 = vcombine.high %v18_v32, %v22_v33 }
   0xc   :  { %1274 = vmatpush3.bf16.msra.mxu0 %v1582_v10  ;;  %v1599_v27 = vld [vmem:[%s1930_s1 + $0xb0] sm:$0xff]   ;;  %v1603_v31 = vld [vmem:[%s1930_s1 + $0xb8] sm:$0xff]   ;;  %v23_v37 = vld [vmem:[%s1931_s0 + $0x28] sm:$0xff] }
   0xd   :  { %1296 = vmatpush3.bf16.msra.mxu1 %v1583_v11  ;;  %1275 = vmatprep.subr.bf16.mxu0 %v1584_v12  ;;  %v1183_v38 = vcombine.low %v19_v34, %v23_v37  ;;  %v1184_v39 = vcombine.high %v19_v34, %v23_v37  ;;  %v1604_v40 = vld [vmem:[%s1930_s1 + $0x140] sm:$0xff]   ;;  %v1608_v44 = vld [vmem:[%s1930_s1 + $0x148] sm:$0xff]   ;;  %v1612_v48 = vld [vmem:[%s1930_s1 + $0x150] sm:$0xff]  }
   0xe   :  { %1297 = vmatprep.subr.bf16.mxu1 %v1585_v13  ;;  %617 = vmatprep.mubr.bf16.mxu0 %v1182_v36  ;;  %v1605_v41 = vld [vmem:[%s1930_s1 + $0x1c0] sm:$0xff]   ;;  %v1609_v45 = vld [vmem:[%s1930_s1 + $0x1c8] sm:$0xff]   ;;  %v1613_v49 = vld [vmem:[%s1930_s1 + $0x1d0] sm:$0xff]  }
   0xf   :  { %658 = vmatprep.mubr.bf16.mxu1 %v1184_v39  ;;  %v1606_v42 = vld [vmem:[%s1930_s1 + $0x100] sm:$0xff]   ;;  %v1610_v46 = vld [vmem:[%s1930_s1 + $0x108] sm:$0xff]   ;;  %v1614_v50 = vld [vmem:[%s1930_s1 + $0x110] sm:$0xff]  }
  0x10   :  { %1276 = vmatpush3.bf16.msra.mxu0 %v1586_v14  ;;  %v1607_v43 = vld [vmem:[%s1930_s1 + $0x180] sm:$0xff]   ;;  %v1611_v47 = vld [vmem:[%s1930_s1 + $0x188] sm:$0xff]   ;;  %v1615_v51 = vld [vmem:[%s1930_s1 + $0x190] sm:$0xff]  }
  0x11   :  { %1298 = vmatpush3.bf16.msra.mxu1 %v1587_v15  ;;  %1277 = vmatprep.subr.bf16.mxu0 %v1588_v16  ;;  %v1616_v52 = vld [vmem:[%s1930_s1 + $0x158] sm:$0xff]   ;;  %v1620_v56 = vld [vmem:[%s1930_s1 + $0x160] sm:$0xff]   ;;  %v1624_v60 = vld [vmem:[%s1930_s1 + $0x168] sm:$0xff]  }
  0x12   :  { %1299 = vmatprep.subr.bf16.mxu1 %v1589_v17  ;;  %v1617_v53 = vld [vmem:[%s1930_s1 + $0x1d8] sm:$0xff]   ;;  %v1621_v57 = vld [vmem:[%s1930_s1 + $0x1e0] sm:$0xff]   ;;  %v1625_v61 = vld [vmem:[%s1930_s1 + $0x1e8] sm:$0xff]  }
  0x13   :  { %v1618_v54 = vld [vmem:[%s1930_s1 + $0x118] sm:$0xff]   ;;  %v1622_v58 = vld [vmem:[%s1930_s1 + $0x120] sm:$0xff]   ;;  %v1626_v62 = vld [vmem:[%s1930_s1 + $0x128] sm:$0xff]  }
  0x14   :  { %1278 = vmatpush3.bf16.msra.mxu0 %v1590_v18  ;;  %v1619_v55 = vld [vmem:[%s1930_s1 + $0x198] sm:$0xff]   ;;  %v1623_v59 = vld [vmem:[%s1930_s1 + $0x1a0] sm:$0xff]   ;;  %v1627_v63 = vld [vmem:[%s1930_s1 + $0x1a8] sm:$0xff]  }
  0x15   :  { %1300 = vmatpush3.bf16.msra.mxu1 %v1591_v19  ;;  %1279 = vmatprep.subr.bf16.mxu0 %v1592_v20  ;;  %v1628_v0 = vld [vmem:[%s1930_s1 + $0x170] sm:$0xff]   ;;  %v1632_v4 = vld [vmem:[%s1930_s1 + $0x178] sm:$0xff]   ;;  %v751_v14 = vld [vmem:[%s1932_s3] sm:$0xff] }
  0x16   :  { %1301 = vmatprep.subr.bf16.mxu1 %v1593_v21  ;;  %v1629_v1 = vld [vmem:[%s1930_s1 + $0x1f0] sm:$0xff]   ;;  %v1633_v5 = vld [vmem:[%s1930_s1 + $0x1f8] sm:$0xff]   ;;  %753 = vxpose.xlu0.b32.start [1/2] (short) %v751_v14, 128  ;;  %v752_v17 = vld [vmem:[%s1932_s3 + $0x8] sm:$0xff] }
  0x17   :  { %v1630_v2 = vld [vmem:[%s1930_s1 + $0x130] sm:$0xff]   ;;  %v1634_v6 = vld [vmem:[%s1930_s1 + $0x138] sm:$0xff]  }
  0x18   :  { %1280 = vmatpush3.bf16.msra.mxu0 %v1594_v22  ;;  %v1631_v3 = vld [vmem:[%s1930_s1 + $0x1b0] sm:$0xff]   ;;  %v1635_v7 = vld [vmem:[%s1930_s1 + $0x1b8] sm:$0xff]  }
  0x19   :  { %1302 = vmatpush3.bf16.msra.mxu1 %v1595_v23  ;;  %1281 = vmatprep.subr.bf16.mxu0 %v1596_v24  ;;  %v20_v8 = vld [vmem:[%s1931_s0 + $0x10] sm:$0xff]  ;;  %v21_v12 = vld [vmem:[%s1931_s0 + $0x18] sm:$0xff]  ;;  %v1180_v24 = vld [vmem:[%s1933_s2] ss:$0 sm:$0xff] }
  0x1a   :  { %1303 = vmatprep.subr.bf16.mxu1 %v1597_v25  ;;  %v24_v9 = vld [vmem:[%s1931_s0 + $0x30] sm:$0xff]  ;;  %v25_v13 = vld [vmem:[%s1931_s0 + $0x38] sm:$0xff]  ;;  %754 = vxpose.xlu0.b32.end [2/2] (short) %v752_v17, 128 }
  0x1b   :  { %v1185_v10 = vcombine.low %v20_v8, %v24_v9  ;;  %v1186_v11 = vcombine.high %v20_v8, %v24_v9  ;;  %v1187_v15 = vcombine.low %v21_v12, %v25_v13  ;;  %v1188_v16 = vcombine.high %v21_v12, %v25_v13 }
  0x1c   :  { %1282 = vmatpush3.bf16.msra.mxu0 %v1598_v26  ;;  %v1640_v8 = vmov 0.0|0.0   ;;  %v1642_v9 = vmov 0.0  }
  0x1d   :  { %1304 = vmatpush3.bf16.msra.mxu1 %v1599_v27  ;;  %1283 = vmatprep.subr.bf16.mxu0 %v1600_v28 }
  0x1e   :  { %1305 = vmatprep.subr.bf16.mxu1 %v1601_v29 }
  0x20   :  { %1284 = vmatpush3.bf16.msra.mxu0 %v1602_v30 }
  0x21   :  { %1306 = vmatpush3.bf16.msra.mxu1 %v1603_v31  ;;  %1313 = vmatprep.subr.bf16.mxu0 %v1604_v40 }
  0x22   :  { %1335 = vmatprep.subr.bf16.mxu1 %v1605_v41 }
  0x23   :  { %618 = vmatmul.mubr.bf16.vlgmr.msra.gmra.mrb[0].mxu0 %v1181_v35 }
  0x24   :  { %659 = vmatmul.mubr.bf16.vlgmr.msra.gmra.mrb[0].mxu1 %v1183_v38  ;;  %1314 = vmatpush3.bf16.msra.mxu0 %v1606_v42 }
  0x25   :  { %1336 = vmatpush3.bf16.msra.mxu1 %v1607_v43  ;;  %1315 = vmatprep.subr.bf16.mxu0 %v1608_v44 }
  0x26   :  { %1337 = vmatprep.subr.bf16.mxu1 %v1609_v45  ;;  %699 = vmatprep.mubr.bf16.mxu0 %v1186_v11 }
  0x27   :  { %740 = vmatprep.mubr.bf16.mxu1 %v1188_v16 }
  0x28   :  { %1316 = vmatpush3.bf16.msra.mxu0 %v1610_v46 }
  0x29   :  { %1338 = vmatpush3.bf16.msra.mxu1 %v1611_v47  ;;  %1317 = vmatprep.subr.bf16.mxu0 %v1612_v48 }
  0x2a   :  { %1339 = vmatprep.subr.bf16.mxu1 %v1613_v49 }
  0x2c   :  { %1318 = vmatpush3.bf16.msra.mxu0 %v1614_v50 }
  0x2d   :  { %1340 = vmatpush3.bf16.msra.mxu1 %v1615_v51  ;;  %1319 = vmatprep.subr.bf16.mxu0 %v1616_v52 }
  0x2e   :  { %1341 = vmatprep.subr.bf16.mxu1 %v1617_v53 }
  0x30   :  { %1320 = vmatpush3.bf16.msra.mxu0 %v1618_v54 }
  0x31   :  { %1342 = vmatpush3.bf16.msra.mxu1 %v1619_v55  ;;  %1321 = vmatprep.subr.bf16.mxu0 %v1620_v56 }
  0x32   :  { %1343 = vmatprep.subr.bf16.mxu1 %v1621_v57 }
  0x34   :  { %1322 = vmatpush3.bf16.msra.mxu0 %v1622_v58 }
  0x35   :  { %1344 = vmatpush3.bf16.msra.mxu1 %v1623_v59  ;;  %1323 = vmatprep.subr.bf16.mxu0 %v1624_v60 }
  0x36   :  { %1345 = vmatprep.subr.bf16.mxu1 %v1625_v61 }
  0x38   :  { %1324 = vmatpush3.bf16.msra.mxu0 %v1626_v62 }
  0x39   :  { %1346 = vmatpush3.bf16.msra.mxu1 %v1627_v63  ;;  %1325 = vmatprep.subr.bf16.mxu0 %v1628_v0 }
  0x3a   :  { %1347 = vmatprep.subr.bf16.mxu1 %v1629_v1 }
  0x3c   :  { %1326 = vmatpush3.bf16.msra.mxu0 %v1630_v2 }
  0x3d   :  { %1348 = vmatpush3.bf16.msra.mxu1 %v1631_v3  ;;  %1327 = vmatprep.subr.bf16.mxu0 %v1632_v4 }
  0x3e   :  { %1349 = vmatprep.subr.bf16.mxu1 %v1633_v5 }
  0x40   :  { %1328 = vmatpush3.bf16.msra.mxu0 %v1634_v6 }
  0x41   :  { %1350 = vmatpush3.bf16.msra.mxu1 %v1635_v7 }
  0x43   :  { %700 = vmatmul.mubr.bf16.vlgmr.msra.gmra.mrb[4].mxu0 %v1185_v10 }
  0x44   :  { %741 = vmatmul.mubr.bf16.vlgmr.msra.gmra.mrb[4].mxu1 %v1187_v15 }
  0x96   :  { %v769_v18 = vpop.trf.xlu0 }
  0x97   :  { %1414 = vmatprep.mubr.msk.f32.mxu0 %vm785_vm0, %v769_v18 }
  0x9a   :  { %v770_v19 = vpop.trf.xlu0 }
  0x9e   :  { %v771_v20 = vpop.trf.xlu0 }
  0xa2   :  { %v772_v22 = vpop.trf.xlu0 }
  0xa6   :  { %v773_v39 = vpop.trf.xlu0 }
  0xaa   :  { %v774_v40 = vpop.trf.xlu0 }
  0xae   :  { %v775_v41 = vpop.trf.xlu0 }
  0xb2   :  { %v776_v42 = vpop.trf.xlu0 }
  0xb6   :  { %v777_v44 = vpop.trf.xlu0 }
  0xba   :  { %v778_v59 = vpop.trf.xlu0 }
  0xbe   :  { %v779_v1 = vpop.trf.xlu0 }
  0xc2   :  { %v780_v3 = vpop.trf.xlu0 }
  0xc6   :  { %v781_v4 = vpop.trf.xlu0 }
  0xca   :  { %v782_v5 = vpop.trf.xlu0 }
  0xce   :  { %v783_v6 = vpop.trf.xlu0 }
  0xd2   :  { %v784_v7 = vpop.trf.xlu0 }
  0xf6   :  { %v1285_v21 = vpop.f32.mrb[0].mxu0 }
  0xf7   :  { %v1307_v23 = vpop.f32.mrb[0].mxu1  ;;  %v1286_v25 = vpop.f32.mrb[1].mxu0 }
  0xf8   :  { %v1287_v26 = vadd.f32 %v1286_v25, %v1285_v21  ;;  %v1308_v27 = vpop.f32.mrb[1].mxu1  ;;  %v1288_v28 = vpop.f32.mrb[2].mxu0 }
  0xf9   :  { %v1309_v29 = vadd.f32 %v1308_v27, %v1307_v23  ;;  %v1310_v30 = vpop.f32.mrb[2].mxu1  ;;  %v1289_v31 = vpop.f32.mrb[3].mxu0 }
  0xfa   :  { %v620_v32 = vadd.f32 %v1287_v26, %v1180_v24  ;;  %v1290_v33 = vadd.f32 %v1289_v31, %v1288_v28  ;;  %v1311_v34 = vpop.f32.mrb[3].mxu1 }
  0xfb   :  { %v1312_v35 = vadd.f32 %v1311_v34, %v1310_v30 }
  0xfc   :  { %v661_v36 = vadd.f32 %v1309_v29, %v620_v32  ;;  %v623_v37 = vadd.f32 %v1290_v33, %v1180_v24 }
  0xfe   :  { %v664_v38 = vadd.f32 %v1312_v35, %v623_v37 }
 0x116   :  { %v1329_v43 = vpop.f32.mrb[4].mxu0 }
 0x117   :  { %v1351_v45 = vpop.f32.mrb[4].mxu1  ;;  %v1330_v46 = vpop.f32.mrb[5].mxu0 }
 0x118   :  { %v1331_v47 = vadd.f32 %v1330_v46, %v1329_v43  ;;  %v1352_v48 = vpop.f32.mrb[5].mxu1  ;;  %v1332_v49 = vpop.f32.mrb[6].mxu0 }
 0x119   :  { %v1353_v50 = vadd.f32 %v1352_v48, %v1351_v45  ;;  %v1354_v51 = vpop.f32.mrb[6].mxu1  ;;  %v1333_v52 = vpop.f32.mrb[7].mxu0 }
 0x11a   :  { %v702_v53 = vadd.f32 %v1331_v47, %v661_v36  ;;  %v1334_v54 = vadd.f32 %v1333_v52, %v1332_v49  ;;  %v1355_v55 = vpop.f32.mrb[7].mxu1 }
 0x11b   :  { %v1356_v56 = vadd.f32 %v1355_v55, %v1354_v51 }
 0x11c   :  { %v743_v57 = vadd.f32 %v1353_v50, %v702_v53  ;;  %v705_v58 = vadd.f32 %v1334_v54, %v664_v38 }
 0x11e   :  { %v749_v60 = vmax.f32 %v743_v57, 0.0  ;;  %v746_v61 = vadd.f32 %v1356_v56, %v705_v58  ;;  %v1643_v58 = vmov 1.0  }
 0x120   :  { %v1895_v62 = vmax.f32 %v746_v61, 0.0  ;;  %1470 = vmatprep.mubr.f32.mxu1 %v749_v60  ;;  %v1054_v63 = vmul.f32 %v749_v60, %v749_v60 }
 0x122   :  { %1056 = vadd.xlane.f32.xlu1 %v1054_v63  ;;  %v1508_v0 = vpack.c.bf16 %v1895_v62, %v749_v60  ;;  %v1055_v2 = vmul.f32 %v1895_v62, %v1895_v62 }
 0x124   :  { %1509 = vmatprep.subr.bf16.mxu0 %v1508_v0 }
 0x125   :  { %1511 = vmatpush3.bf16.msra.mxu0 %v1508_v0 }
 0x126   :  { %1058 = vadd.xlane.f32.xlu1 %v1055_v2  ;;  %1544 = vmatprep.subr.bf16.mxu0 %v1640_v8 }
 0x128   :  { %1415 = vmatmul.mubr.msk.f32.vlgmr.msra.gmra.mrb[8].mxu0 %vm785_vm0, %v770_v19 }
 0x129   :  { %1417 = vmatprep.mubr.msk.f32.mxu0 %vm785_vm0, %v771_v20 }
 0x12c   :  { %1418 = vmatmul.mubr.msk.f32.gmra.mrb[10].mxu0 %vm785_vm0, %v772_v22 }
 0x12d   :  { %1420 = vmatprep.mubr.msk.f32.mxu0 %vm785_vm0, %v773_v39 }
 0x130   :  { %1421 = vmatmul.mubr.msk.f32.gmra.mrb[12].mxu0 %vm785_vm0, %v774_v40 }
 0x131   :  { %1423 = vmatprep.mubr.msk.f32.mxu0 %vm785_vm0, %v775_v41 }
 0x134   :  { %1424 = vmatmul.mubr.msk.f32.gmra.mrb[14].mxu0 %vm785_vm0, %v776_v42 }
 0x135   :  { %1426 = vmatprep.mubr.msk.f32.mxu0 %vm785_vm0, %v777_v44 }
 0x138   :  { %1427 = vmatmul.mubr.msk.f32.gmra.mrb[16].mxu0 %vm785_vm0, %v778_v59  ;;  %v1146_v59 = vlaneseq }
 0x139   :  { %1429 = vmatprep.mubr.msk.f32.mxu0 %vm785_vm0, %v779_v1 }
 0x13a   :  { %v1147_v60 = vshrl.u32 %v1146_v59, 7 }
 0x13c   :  { %1430 = vmatmul.mubr.msk.f32.gmra.mrb[18].mxu0 %vm785_vm0, %v780_v3  ;;  %v1148_v63 = vsub.s32 0, %v1147_v60 }
 0x13d   :  { %1432 = vmatprep.mubr.msk.f32.mxu0 %vm785_vm0, %v781_v4 }
 0x140   :  { %1433 = vmatmul.mubr.msk.f32.gmra.mrb[20].mxu0 %vm785_vm0, %v782_v5 }
 0x141   :  { %1435 = vmatprep.mubr.msk.f32.mxu0 %vm785_vm0, %v783_v6 }
 0x144   :  { %1436 = vmatmul.mubr.msk.f32.gmra.mrb[22].mxu0 %vm785_vm0, %v784_v7 }
 0x145   :  { %1505 = vmatprep.mubr.msk.f32.mxu0 %vm1641_vm1, %v1642_v9 }
 0x1af   :  { %v1057_v61 = vpop.xlane.xlu1 %1056 }
 0x1b3   :  { %v1059_v5 = vpop.xlane.xlu1 %1058 }
 0x1fb   :  { %v1416_v10 = vpop.f32.mrb[8].mxu0 }
 0x1fc   :  { %v1061_v11 = vmul.f32 %v1416_v10, %v1416_v10  ;;  %v900_v12 = vpop.f32.mrb[9].mxu0 }
 0x1fd   :  { %v1512_v13 = vpack.c.bf16 %v1416_v10, %v900_v12  ;;  %v1060_v14 = vmul.f32 %v900_v12, %v900_v12 }
 0x1ff   :  { %v1545_v15 = vpack.c.bf16 %v1061_v11, %v1060_v14  ;;  %1513 = vmatprep.subr.bf16.mxu1 %v1512_v13  ;;  %v1419_v16 = vpop.f32.mrb[10].mxu0 }
 0x200   :  { %1515 = vmatpush3.bf16.xpose.msra.mxu1 %v1512_v13  ;;  %v1063_v17 = vmul.f32 %v1419_v16, %v1419_v16  ;;  %v910_v18 = vpop.f32.mrb[11].mxu0 }
 0x201   :  { %1546 = vmatpush3.bf16.xpose.msra.mxu0 %v1545_v15  ;;  %v1516_v19 = vpack.c.bf16 %v1419_v16, %v910_v18  ;;  %v1062_v20 = vmul.f32 %v910_v18, %v910_v18 }
 0x202   :  { %1547 = vmatprep.subr.bf16.mxu0 %v1640_v8 }
 0x203   :  { %v1548_v21 = vpack.c.bf16 %v1063_v17, %v1062_v20  ;;  %1517 = vmatprep.subr.bf16.mxu1 %v1516_v19  ;;  %v1422_v22 = vpop.f32.mrb[12].mxu0 }
 0x204   :  { %v1065_v23 = vmul.f32 %v1422_v22, %v1422_v22  ;;  %v920_v24 = vpop.f32.mrb[13].mxu0 }
 0x205   :  { %v1520_v25 = vpack.c.bf16 %v1422_v22, %v920_v24  ;;  %v1064_v26 = vmul.f32 %v920_v24, %v920_v24 }
 0x207   :  { %v1551_v27 = vpack.c.bf16 %v1065_v23, %v1064_v26  ;;  %v1425_v28 = vpop.f32.mrb[14].mxu0 }
 0x208   :  { %1519 = vmatpush3.bf16.xpose.msra.mxu1 %v1516_v19  ;;  %v1067_v29 = vmul.f32 %v1425_v28, %v1425_v28  ;;  %v930_v30 = vpop.f32.mrb[15].mxu0 }
 0x209   :  { %1549 = vmatpush3.bf16.xpose.msra.mxu0 %v1548_v21  ;;  %1521 = vmatprep.subr.bf16.mxu1 %v1520_v25  ;;  %v1524_v31 = vpack.c.bf16 %v1425_v28, %v930_v30  ;;  %v1066_v32 = vmul.f32 %v930_v30, %v930_v30 }
 0x20a   :  { %1550 = vmatprep.subr.bf16.mxu0 %v1640_v8 }
 0x20b   :  { %v1554_v33 = vpack.c.bf16 %v1067_v29, %v1066_v32  ;;  %v1428_v34 = vpop.f32.mrb[16].mxu0 }
 0x20c   :  { %v1069_v35 = vmul.f32 %v1428_v34, %v1428_v34  ;;  %v940_v36 = vpop.f32.mrb[17].mxu0 }
 0x20d   :  { %v1528_v37 = vpack.c.bf16 %v1428_v34, %v940_v36  ;;  %v1068_v38 = vmul.f32 %v940_v36, %v940_v36 }
 0x20f   :  { %v1557_v39 = vpack.c.bf16 %v1069_v35, %v1068_v38  ;;  %v1431_v40 = vpop.f32.mrb[18].mxu0 }
 0x210   :  { %1523 = vmatpush3.bf16.xpose.msra.mxu1 %v1520_v25  ;;  %v1071_v41 = vmul.f32 %v1431_v40, %v1431_v40  ;;  %v950_v42 = vpop.f32.mrb[19].mxu0 }
 0x211   :  { %1552 = vmatpush3.bf16.xpose.msra.mxu0 %v1551_v27  ;;  %1525 = vmatprep.subr.bf16.mxu1 %v1524_v31  ;;  %v1532_v43 = vpack.c.bf16 %v1431_v40, %v950_v42  ;;  %v1070_v44 = vmul.f32 %v950_v42, %v950_v42 }
 0x212   :  { %1553 = vmatprep.subr.bf16.mxu0 %v1640_v8 }
 0x213   :  { %v1560_v45 = vpack.c.bf16 %v1071_v41, %v1070_v44  ;;  %v1434_v46 = vpop.f32.mrb[20].mxu0 }
 0x214   :  { %v1073_v47 = vmul.f32 %v1434_v46, %v1434_v46  ;;  %v960_v48 = vpop.f32.mrb[21].mxu0 }
 0x215   :  { %v1536_v49 = vpack.c.bf16 %v1434_v46, %v960_v48  ;;  %v1072_v50 = vmul.f32 %v960_v48, %v960_v48 }
 0x217   :  { %v1563_v51 = vpack.c.bf16 %v1073_v47, %v1072_v50  ;;  %v1437_v52 = vpop.f32.mrb[22].mxu0 }
 0x218   :  { %1527 = vmatpush3.bf16.xpose.msra.mxu1 %v1524_v31  ;;  %v1075_v53 = vmul.f32 %v1437_v52, %v1437_v52  ;;  %v970_v54 = vpop.f32.mrb[23].mxu0 }
 0x219   :  { %1555 = vmatpush3.bf16.xpose.msra.mxu0 %v1554_v33  ;;  %1529 = vmatprep.subr.bf16.mxu1 %v1528_v37  ;;  %v1540_v55 = vpack.c.bf16 %v1437_v52, %v970_v54  ;;  %v1074_v56 = vmul.f32 %v970_v54, %v970_v54 }
 0x21a   :  { %1556 = vmatprep.subr.bf16.mxu0 %v1640_v8 }
 0x21b   :  { %v1566_v57 = vpack.c.bf16 %v1075_v53, %v1074_v56 }
 0x220   :  { %1531 = vmatpush3.bf16.xpose.msra.mxu1 %v1528_v37 }
 0x221   :  { %1558 = vmatpush3.bf16.xpose.msra.mxu0 %v1557_v39  ;;  %1533 = vmatprep.subr.bf16.mxu1 %v1532_v43 }
 0x222   :  { %1559 = vmatprep.subr.bf16.mxu0 %v1640_v8 }
 0x228   :  { %1535 = vmatpush3.bf16.xpose.msra.mxu1 %v1532_v43 }
 0x229   :  { %1561 = vmatpush3.bf16.xpose.msra.mxu0 %v1560_v45  ;;  %1537 = vmatprep.subr.bf16.mxu1 %v1536_v49 }
 0x22a   :  { %1562 = vmatprep.subr.bf16.mxu0 %v1640_v8 }
 0x230   :  { %1539 = vmatpush3.bf16.xpose.msra.mxu1 %v1536_v49 }
 0x231   :  { %1564 = vmatpush3.bf16.xpose.msra.mxu0 %v1563_v51  ;;  %1541 = vmatprep.subr.bf16.mxu1 %v1540_v55 }
 0x232   :  { %1565 = vmatprep.subr.bf16.mxu0 %v1640_v8 }
 0x238   :  { %1543 = vmatpush3.bf16.xpose.msra.mxu1 %v1540_v55 }
 0x239   :  { %1567 = vmatpush3.bf16.xpose.msra.mxu0 %v1566_v57 }
 0x23f   :  { %1471 = vmatmul.mubr.f32.vlgmr.msra.gmra.mrb[8].mxu1 %v1895_v62 }
 0x240   :  { %1506 = vmatmul.mubr.f32.vlgmr.msra.gmra.mrb[24].mxu0 %v1643_v58 }
 0x312   :  { %v1472_v0 = vpop.f32.mrb[8].mxu1 }
 0x313   :  { %v1045_v1 = vpop.f32.mrb[9].mxu1  ;;  %v1142_v2 = vpop.f32.mrb[24].mxu0  ;;  %v1153_v6 = vmul.f32 2.0, %v1472_v0 }
 0x314   :  { %v1149_v3 = vrot.slane %v1142_v2, %v1148_v63  ;;  %v1507_v4 = vpop.f32.mrb[25].mxu0  ;;  %v1152_v7 = vmul.f32 2.0, %v1045_v1 }
 0x316   :  { %v1150_v9 = vadd.f32 %v1149_v3, %v1057_v61  ;;  %v1151_v8 = vadd.f32 %v1149_v3, %v1059_v5 }
 0x318   :  { %v1154_v10 = vsub.f32 %v1150_v9, %v1152_v7  ;;  %v1155_v11 = vsub.f32 %v1151_v8, %v1153_v6 }
 0x31a   :  { %v1156_v12 = vmax.f32 %v1154_v10, 0.0  ;;  %v1157_v62 = vmax.f32 %v1155_v11, 0.0 }
 0x31c   :  { %1636 = vrsqrt.f32 %v1156_v12  ;;  %vm1160_vm2 = vcmp.eq.f32.partialorder %v1156_v12, inf  ;;  %v1163_v16 = vand.u32 2147483648, %v1156_v12  ;;  %vm1162_vm3 = vcmp.eq.f32.partialorder %v1156_v12, 0.0 }
 0x31d   :  { %1638 = vrsqrt.f32 %v1157_v62  ;;  %vm1167_vm4 = vcmp.eq.f32.partialorder %v1157_v62, inf  ;;  %v1170_v19 = vand.u32 2147483648, %v1157_v62  ;;  %vm1169_vm5 = vcmp.eq.f32.partialorder %v1157_v62, 0.0 }
 0x326   :  { %v1637_v13 = vpop.eup %1636 }
 0x327   :  { %v1639_v14 = vpop.eup %1638  ;;  %v1159_v15 = vmul.f32 %v1637_v13, %v1156_v12 }
 0x328   :  { %v1166_v17 = vmul.f32 %v1639_v14, %v1157_v62 }
 0x329   :  { %v1161_v18 = vsel %vm1160_vm2, %v1156_v12, %v1159_v15 }
 0x32a   :  { %v1164_v20 = vsel %vm1162_vm3, %v1163_v16, %v1161_v18  ;;  %v1168_v21 = vsel %vm1167_vm4, %v1157_v62, %v1166_v17 }
 0x32b   :  { %v1171_v22 = vsel %vm1169_vm5, %v1170_v19, %v1168_v21  ;;  %v1172_v23 = vsub.f32 0.0, %v1164_v20 }
 0x32c   :  { %v1173_v24 = vsub.f32 0.0, %v1171_v22 }
 0x32d   :  { %1174 = vst [vmem:[%s1934_s4] sm:$0xff] %v1172_v23 }
 0x32e   :  { %1175 = vst [vmem:[%s1934_s4 + $0x8] sm:$0xff] %v1173_v24 }

</bundles_post_ra>
